<compile_context>
chip_gen: v7x
topology: tpu7x:2x2x1
jax: 0.10.0
libtpu: 0.0.40
codegen_flags: <defaults>
</compile_context>

<pallas_src>
import jax
import jax.numpy as jnp
from jax import lax
from jax.experimental import pallas as pl
from jax.experimental.pallas import tpu as pltpu


# Double-buffered edge_dist row-tile budget (review: cap ~24 MiB so it fits
# v7x's 64 MiB physical VMEM with headroom; v5e/v6e have 128 MiB physical).
_DIST_TILE_BUDGET_BYTES = 24 * 1024 * 1024
# Scoped VMEM limit handed to Mosaic (v5e default scope is only 16 MiB).
_VMEM_LIMIT_BYTES = 48 * 1024 * 1024


def _round_up(v, m):
    return ((v + m - 1) // m) * m


def _external_energy_kernel(sched_ref, nvalid_ref, pts_ref, dist_ref, out_ref, wx_ref):
    """Adds the contribution of one scheduled row-block of edge_dist.

    grid = (n_splits, tiles_per_split). The first ("parallel") axis lets v7x
    shard the row stream across both TensorCores: each split owns its own
    (8, W) partial-output block. The second ("arbitrary") axis streams the
    scheduled row blocks; out_ref stays resident across it and acts as the
    accumulator.
    """
    c = pl.program_id(0)
    i = pl.program_id(1)
    n_splits = pl.num_programs(0)

    pts = pts_ref[...]                         # (N_pad, 2) f32, rows = (y, x)
    n_pts = pts.shape[0]
    t_h = dist_ref.shape[0]
    w = dist_ref.shape[1]

    @pl.when(i == 0)
    def _init():
        out_ref[...] = jnp.zeros_like(out_ref)
        # Column tent weights are independent of the row block: compute once
        # per split and keep resident in VMEM (hoisted out of the loop).
        x = pts[:, 1:2]                                                   # (N, 1)
        cols = lax.broadcasted_iota(jnp.int32, (n_pts, w), 1).astype(jnp.float32)
        wx_ref[...] = jnp.maximum(1.0 - jnp.abs(cols - x), 0.0)          # (N, W)

    step = i * n_splits + c                    # interleaved global schedule index

    @pl.when(step < nvalid_ref[0])
    def _accumulate():
        y = pts[:, 0:1]                                                   # (N, 1)
        blk = sched_ref[step]                                             # block id
        row0 = (blk * t_h).astype(jnp.float32)
        rows = lax.broadcasted_iota(jnp.int32, (n_pts, t_h), 1).astype(jnp.float32) + row0
        wy = jnp.maximum(1.0 - jnp.abs(rows - y), 0.0)                    # (N, t_h)
        # (N, t_h) @ (t_h, W) on the MXU with f32 accumulation.
        rowmix = jnp.dot(wy, dist_ref[...], preferred_element_type=jnp.float32)
        contrib = rowmix * wx_ref[...]                                    # (N, W)
        # Fold N_pad (multiple of 8) down to 8 sublanes with static slices; the
        # final cross-lane reduction happens once in the wrapper.
        acc8 = contrib[0:8, :]
        for g in range(1, n_pts // 8):
            acc8 = acc8 + contrib[g * 8:(g + 1) * 8, :]
        out_ref[...] += acc8


def external_energy_pallas(pts, edge_dist, *, max_tile_rows=None):
    """sum_n bilinear_sample(edge_dist, pts[n]); map_coordinates(order=1, cval=0) semantics."""
    pts = jnp.asarray(pts, jnp.float32)
    edge_dist = jnp.asarray(edge_dist, jnp.float32)
    n = pts.shape[0]
    h, w = edge_dist.shape

    # ---- Row tile: biggest multiple-of-8 tile whose double buffer fits the budget.
    h8 = _round_up(h, 8)
    budget_rows = max(8, _DIST_TILE_BUDGET_BYTES // (2 * w * 4))
    t_h = max(8, min(h8, (budget_rows // 8) * 8))
    if max_tile_rows is not None:                       # test hook / manual override
        t_h = min(t_h, max(8, (max_tile_rows // 8) * 8))
    h_pad = _round_up(h8, t_h)
    n_blocks = h_pad // t_h

    # Zero-pad rows: padded rows contribute 0 to the tent sum (cval=0 semantics).
    if h_pad != h:
        edge_dist = jnp.pad(edge_dist, ((0, h_pad - h), (0, 0)))

    # Pad points to a multiple of 8 with far-out-of-grid coords (zero tent weight).
    n_pad = _round_up(max(n, 8), 8)
    if n_pad != n:
        pts_k = jnp.concatenate([pts, jnp.full((n_pad - n, 2), -4.0, jnp.float32)], 0)
    else:
        pts_k = pts
    # TODO(synk): for very large contours (N*W intermediates of several MiB),
    # additionally tile the point dimension; not needed at these sizes.

    # ---- Row-block schedule (scalar prefetch): each point touches only rows
    # floor(y) and floor(y)+1, so at most min(n_blocks, 2N) blocks matter.
    f0 = jnp.floor(pts[:, 0]).astype(jnp.int32)
    touched = jnp.clip(jnp.concatenate([f0, f0 + 1]) // t_h, 0, n_blocks - 1)  # (2N,)
    touched = jnp.sort(touched)
    is_new = jnp.concatenate([jnp.ones((1,), jnp.bool_), touched[1:] != touched[:-1]])
    n_valid = jnp.sum(is_new.astype(jnp.int32))
    pos = jnp.cumsum(is_new.astype(jnp.int32)) - 1
    pad_blk = touched[-1]                              # always a valid block id
    target = jnp.where(is_new, pos, 2 * n)             # out-of-range -> dropped
    sched = jnp.full((2 * n,), pad_blk, jnp.int32).at[target].set(touched, mode="drop")

    n_grid = min(n_blocks, 2 * n)                       # static upper bound
    n_splits = 2 if n_grid >= 2 else 1                  # v7x: one row stream per core
    tiles_per_split = -(-n_grid // n_splits)
    sched_len = tiles_per_split * n_splits
    if sched_len <= 2 * n:
        sched = sched[:sched_len]
    else:
        sched = jnp.concatenate([sched, jnp.full((sched_len - 2 * n,), pad_blk, jnp.int32)])
    n_valid_arr = n_valid.astype(jnp.int32).reshape((1,))

    partials = pl.pallas_call(
        _external_energy_kernel,
        out_shape=jax.ShapeDtypeStruct((n_splits, 8, w), jnp.float32),
        grid_spec=pltpu.PrefetchScalarGridSpec(
            num_scalar_prefetch=2,
            grid=(n_splits, tiles_per_split),
            in_specs=[
                pl.BlockSpec((n_pad, 2), lambda c, i, sref, nref: (0, 0)),
                pl.BlockSpec((t_h, w),
                             lambda c, i, sref, nref: (sref[i * n_splits + c], 0)),
            ],
            out_specs=pl.BlockSpec((None, 8, w), lambda c, i, sref, nref: (c, 0, 0)),
            scratch_shapes=[pltpu.VMEM((n_pad, w), jnp.float32)],
        ),
        compiler_params=pltpu.CompilerParams(
            dimension_semantics=("parallel", "arbitrary"),
            vmem_limit_bytes=_VMEM_LIMIT_BYTES),
    )(sched, n_valid_arr, pts_k, edge_dist)

    return jnp.sum(partials)


def snake_loss(flattened_pts, edge_dist):
    pts = jnp.asarray(flattened_pts, jnp.float32).reshape(-1, 2)
    external_energy = external_energy_pallas(pts, edge_dist)

    # O(N) spacing / curvature terms in plain JAX (per the performance review:
    # 2-lane-wide data; in-kernel rolls waste XLU shuffles and block the
    # per-core partial-output layout).
    prev_pts = jnp.roll(pts, 1, axis=0)
    next_pts = jnp.roll(pts, -1, axis=0)
    disp = pts - prev_pts
    point_distances = jnp.sqrt(disp[:, 0] ** 2 + disp[:, 1] ** 2)
    mean_dist = jnp.mean(point_distances)
    spacing_energy = jnp.sum((point_distances - mean_dist) ** 2)
    curv = prev_pts - 2.0 * pts + next_pts
    curvature_energy = jnp.sum(curv[:, 0] ** 2 + curv[:, 1] ** 2)

    alpha, beta = 0.5, 0.25
    return external_energy + alpha * spacing_energy + beta * curvature_energy


def dice_loss_forward(inputs, targets, pred, flattened_pts, edge_dist, smooth=1):
    # inputs / targets / pred / smooth never influence the returned loss in the
    # reference forward (dead code), so no work is issued for them.
    del inputs, targets, pred, smooth
    return snake_loss(flattened_pts, edge_dist)


# -------------------------- pure-JAX reference ----------------------------
def _reference_loss(flattened_pts, edge_dist):
    pts = jnp.asarray(flattened_pts, jnp.float32).reshape(-1, 2)
    dist_vals = jax.scipy.ndimage.map_coordinates(
        jnp.asarray(edge_dist, jnp.float32), [pts[:, 0], pts[:, 1]], order=1)
    external_energy = jnp.sum(dist_vals)
    prev_pts = jnp.roll(pts, 1, axis=0)
    next_pts = jnp.roll(pts, -1, axis=0)
    displacements = pts - prev_pts
    point_distances = jnp.sqrt(displacements[:, 0] ** 2 + displacements[:, 1] ** 2)
    mean_dist = jnp.mean(point_distances)
    spacing_energy = jnp.sum((point_distances - mean_dist) ** 2)
    curvature_1d = prev_pts - 2 * pts + next_pts
    curvature = curvature_1d[:, 0] ** 2 + curvature_1d[:, 1] ** 2
    curvature_energy = jnp.sum(curvature)
    return external_energy + 0.5 * spacing_energy + 0.25 * curvature_energy


if __name__ == "__main__":
    key = jax.random.PRNGKey(0)
    k1, k2, k3, k4, k5, k6, k7 = jax.random.split(key, 7)

    # Shapes implied by the module: small segmentation batch + a contour of
    # N points + an (H, W) edge-distance map.
    B, C, H, W = 2, 4, 16, 16
    N_PTS = 8

    inputs = jax.random.uniform(k1, (B, C, H, W), dtype=jnp.float32)
    targets = jax.random.uniform(k2, (B, C, H, W), dtype=jnp.float32)
    pred = jax.random.uniform(k3, (B, C, H, W), dtype=jnp.float32)
    flattened_pts = jax.random.uniform(
        k4, (2 * N_PTS,), minval=1.0, maxval=float(min(H, W) - 2), dtype=jnp.float32)
    edge_dist = jax.random.uniform(k5, (H, W), dtype=jnp.float32)

    loss = dice_loss_forward(inputs, targets, pred, flattened_pts, edge_dist)
    loss = jax.block_until_ready(loss)
    ref = jax.block_until_ready(_reference_loss(flattened_pts, edge_dist))
    assert jnp.allclose(loss, ref, rtol=1e-4, atol=1e-4), (loss, ref)

    # Second case: non-multiple-of-8 height, forced multi-tile streaming,
    # 2-way split, tile-straddling and out-of-grid points (cval=0 semantics).
    H2, W2, N2 = 40, 128, 12
    edge_dist2 = jax.random.uniform(k6, (H2, W2), dtype=jnp.float32)
    pts2 = jax.random.uniform(k7, (N2, 2), minval=0.0, maxval=float(H2 - 1),
                              dtype=jnp.float32)
    pts2 = pts2.at[0].set(jnp.array([-0.5, 3.25], jnp.float32))    # above the grid
    pts2 = pts2.at[1].set(jnp.array([45.7, 100.3], jnp.float32))   # below the grid
    pts2 = pts2.at[2].set(jnp.array([15.999, 64.5], jnp.float32))  # tile boundary

    ext2 = jax.block_until_ready(
        external_energy_pallas(pts2, edge_dist2, max_tile_rows=16))
    ref_ext2 = jnp.sum(jax.scipy.ndimage.map_coordinates(
        edge_dist2, [pts2[:, 0], pts2[:, 1]], order=1))
    assert jnp.allclose(ext2, ref_ext2, rtol=1e-4, atol=1e-4), (ext2, ref_ext2)

    print("KERNEL_OK")
</pallas_src>

<mosaic_0001>
module attributes {stable_mosaic.version = 11 : i64} {
  func.func @_external_energy_kernel(%arg0: i32, %arg1: i32, %arg2: memref<1xi32, #tpu.memory_space<smem>>, %arg3: memref<1xi32, #tpu.memory_space<smem>>, %arg4: memref<8x2xf32, #tpu.memory_space<vmem>>, %arg5: memref<16x16xf32, #tpu.memory_space<vmem>>, %arg6: memref<1x8x16xf32, #tpu.memory_space<vmem>>, %arg7: memref<8x16xf32, #tpu.memory_space<vmem>>) attributes {dimension_semantics = [#tpu.dimension_semantics<parallel>, #tpu.dimension_semantics<arbitrary>], iteration_bounds = array<i64: 1, 1>, scalar_prefetch = 2 : i64, scratch_operands = 1 : i64, tpu.core_type = #tpu.core_type<tc>, window_params = [{pipeline_mode = #tpu.pipeline_mode<synchronous>, transform_indices = @transform_0, window_bounds = array<i64: 8, 2>}, {transform_indices = @transform_1, window_bounds = array<i64: 16, 16>}, {transform_indices = @transform_2, window_bounds = array<i64: 1, 8, 16>}]} {
    %c0 = arith.constant 0 : index
    %c0_0 = arith.constant 0 : index
    %0 = vector.load %arg4[%c0, %c0_0] : memref<8x2xf32, #tpu.memory_space<vmem>>, vector<8x2xf32>
    %c0_i32 = arith.constant 0 : i32
    %1 = arith.cmpi eq, %arg1, %c0_i32 : i32
    %2 = arith.extui %1 : i1 to i32
    %c0_i32_1 = arith.constant 0 : i32
    %3 = arith.cmpi ne, %2, %c0_i32_1 : i32
    scf.if %3 {
      %cst = arith.constant 0.000000e+00 : f32
      %10 = vector.broadcast %cst : f32 to vector<8x16xf32>
      %c0_4 = arith.constant 0 : index
      %c0_5 = arith.constant 0 : index
      %c0_6 = arith.constant 0 : index
      %11 = vector.load %arg6[%c0_4, %c0_5, %c0_6] : memref<1x8x16xf32, #tpu.memory_space<vmem>>, vector<1x8x16xf32>
      %12 = vector.shape_cast %11 : vector<1x8x16xf32> to vector<8x16xf32>
      %13 = vector.shape_cast %10 : vector<8x16xf32> to vector<1x8x16xf32>
      tpu.vector_store %arg6[%c0_4, %c0_5, %c0_6], %13 {strides = array<i32>} : memref<1x8x16xf32, #tpu.memory_space<vmem>>, vector<1x8x16xf32>,
      %14 = vector.extract_strided_slice %0 {offsets = [0, 1], sizes = [8, 1], strides = [1, 1]} : vector<8x2xf32> to vector<8x1xf32>
      %15 = tpu.iota {dimensions = array<i32: 1>} : vector<8x16xi32>
      %16 = arith.sitofp %15 : vector<8x16xi32> to vector<8x16xf32>
      %17 = vector.broadcast %14 : vector<8x1xf32> to vector<8x16xf32>
      %18 = arith.subf %16, %17 : vector<8x16xf32>
      %19 = math.absf %18 : vector<8x16xf32>
      %cst_7 = arith.constant 1.000000e+00 : f32
      %20 = vector.broadcast %cst_7 : f32 to vector<8x16xf32>
      %21 = arith.subf %20, %19 : vector<8x16xf32>
      %cst_8 = arith.constant 0.000000e+00 : f32
      %22 = vector.broadcast %cst_8 : f32 to vector<8x16xf32>
      %23 = arith.maximumf %21, %22 : vector<8x16xf32>
      %c0_9 = arith.constant 0 : index
      %c0_10 = arith.constant 0 : index
      %24 = vector.load %arg7[%c0_9, %c0_10] : memref<8x16xf32, #tpu.memory_space<vmem>>, vector<8x16xf32>
      tpu.vector_store %arg7[%c0_9, %c0_10], %23 {strides = array<i32>} : memref<8x16xf32, #tpu.memory_space<vmem>>, vector<8x16xf32>,
    } else {
    }
    %c1_i32 = arith.constant 1 : i32
    %4 = arith.muli %arg1, %c1_i32 : i32
    %5 = arith.addi %4, %arg0 : i32
    %c0_2 = arith.constant 0 : index
    %6 = memref.load %arg3[%c0_2] : memref<1xi32, #tpu.memory_space<smem>>
    %7 = arith.cmpi slt, %5, %6 : i32
    %8 = arith.extui %7 : i1 to i32
    %c0_i32_3 = arith.constant 0 : i32
    %9 = arith.cmpi ne, %8, %c0_i32_3 : i32
    scf.if %9 {
      %10 = vector.extract_strided_slice %0 {offsets = [0, 0], sizes = [8, 1], strides = [1, 1]} : vector<8x2xf32> to vector<8x1xf32>
      %11 = arith.index_cast %5 : i32 to index
      %12 = memref.load %arg2[%11] : memref<1xi32, #tpu.memory_space<smem>>
      %c16_i32 = arith.constant 16 : i32
      %13 = arith.muli %12, %c16_i32 : i32
      %14 = arith.sitofp %13 : i32 to f32
      %15 = tpu.iota {dimensions = array<i32: 1>} : vector<8x16xi32>
      %16 = arith.sitofp %15 : vector<8x16xi32> to vector<8x16xf32>
      %17 = vector.broadcast %14 : f32 to vector<8x16xf32>
      %18 = arith.addf %16, %17 : vector<8x16xf32>
      %19 = vector.broadcast %10 : vector<8x1xf32> to vector<8x16xf32>
      %20 = arith.subf %18, %19 : vector<8x16xf32>
      %21 = math.absf %20 : vector<8x16xf32>
      %cst = arith.constant 1.000000e+00 : f32
      %22 = vector.broadcast %cst : f32 to vector<8x16xf32>
      %23 = arith.subf %22, %21 : vector<8x16xf32>
      %cst_4 = arith.constant 0.000000e+00 : f32
      %24 = vector.broadcast %cst_4 : f32 to vector<8x16xf32>
      %25 = arith.maximumf %23, %24 : vector<8x16xf32>
      %c0_5 = arith.constant 0 : index
      %c0_6 = arith.constant 0 : index
      %26 = vector.load %arg5[%c0_5, %c0_6] : memref<16x16xf32, #tpu.memory_space<vmem>>, vector<16x16xf32>
      %cst_7 = arith.constant dense<0.000000e+00> : vector<8x16xf32>
      %27 = tpu.matmul %25, %26, %cst_7 {dimension_numbers = #tpu.dot_dimension_numbers<[1], [0], [0], [1], [0, 0, 1, 1], [], []>} : vector<8x16xf32>, vector<16x16xf32>, vector<8x16xf32> -> vector<8x16xf32>
      %c0_8 = arith.constant 0 : index
      %c0_9 = arith.constant 0 : index
      %28 = vector.load %arg7[%c0_8, %c0_9] : memref<8x16xf32, #tpu.memory_space<vmem>>, vector<8x16xf32>
      %29 = arith.mulf %27, %28 : vector<8x16xf32>
      %c0_10 = arith.constant 0 : index
      %c0_11 = arith.constant 0 : index
      %c0_12 = arith.constant 0 : index
      %30 = vector.load %arg6[%c0_10, %c0_11, %c0_12] : memref<1x8x16xf32, #tpu.memory_space<vmem>>, vector<1x8x16xf32>
      %31 = vector.shape_cast %30 : vector<1x8x16xf32> to vector<8x16xf32>
      %32 = arith.addf %31, %29 : vector<8x16xf32>
      %c0_13 = arith.constant 0 : index
      %c0_14 = arith.constant 0 : index
      %c0_15 = arith.constant 0 : index
      %33 = vector.load %arg6[%c0_13, %c0_14, %c0_15] : memref<1x8x16xf32, #tpu.memory_space<vmem>>, vector<1x8x16xf32>
      %34 = vector.shape_cast %33 : vector<1x8x16xf32> to vector<8x16xf32>
      %35 = vector.shape_cast %32 : vector<8x16xf32> to vector<1x8x16xf32>
      tpu.vector_store %arg6[%c0_13, %c0_14, %c0_15], %35 {strides = array<i32>} : memref<1x8x16xf32, #tpu.memory_space<vmem>>, vector<1x8x16xf32>,
    } else {
    }
    return
  }
  func.func @transform_0(%arg0: i32, %arg1: i32, %arg2: memref<1xi32, #tpu.memory_space<smem>>, %arg3: memref<1xi32, #tpu.memory_space<smem>>) -> (i32, i32) {
    %c0_i32 = arith.constant 0 : i32
    %c0_i32_0 = arith.constant 0 : i32
    %c0_i32_1 = arith.constant 0 : i32
    return %c0_i32, %c0_i32_0 : i32, i32
  }
  func.func @transform_1(%arg0: i32, %arg1: i32, %arg2: memref<1xi32, #tpu.memory_space<smem>>, %arg3: memref<1xi32, #tpu.memory_space<smem>>) -> (i32, i32) {
    %c1_i32 = arith.constant 1 : i32
    %0 = arith.muli %arg1, %c1_i32 : i32
    %1 = arith.addi %0, %arg0 : i32
    %2 = arith.index_cast %1 : i32 to index
    %3 = memref.load %arg2[%2] : memref<1xi32, #tpu.memory_space<smem>>
    %c0_i32 = arith.constant 0 : i32
    %c0_i32_0 = arith.constant 0 : i32
    return %3, %c0_i32 : i32, i32
  }
  func.func @transform_2(%arg0: i32, %arg1: i32, %arg2: memref<1xi32, #tpu.memory_space<smem>>, %arg3: memref<1xi32, #tpu.memory_space<smem>>) -> (i32, i32, i32) {
    %c0_i32 = arith.constant 0 : i32
    %c0_i32_0 = arith.constant 0 : i32
    %c0_i32_1 = arith.constant 0 : i32
    return %arg0, %c0_i32, %c0_i32_0 : i32, i32, i32
  }
}

</mosaic_0001>

<bundles_post_ra>
// kernel: tpu_custom_call.1
= control target key start
LH: loop header
LB: loop body
LE: loop exit
PB: predicated region body
PF: predicated region fallthrough
CT: control target
= control target key end

     0   :  { %s299_s0 = inlined_call_operand.<no memory space> [shape: s32[1], index: 0, kind: input, shape index: {}]   ;;  %s300_s1 = inlined_call_operand.<no memory space> [shape: s32[1], index: 1, kind: input, shape index: {}]   ;;  %s301_s2 = inlined_call_operand.vmem [shape: f32[8,2], index: 2, kind: input, shape index: {}]   ;;  %s302_s3 = inlined_call_operand.vmem [shape: f32[16,16], index: 3, kind: input, shape index: {}]   ;;  %s303_s4 = inlined_call_operand.hbm [shape: f32[1,8,16], index: 4, kind: output, shape index: {}]  }
   0x1   :  { %9 = sst [smem:[#allocation4]] %s299_s0 }
   0x2   :  { %v43_v0 = vld [vmem:[%s301_s2] sm:$0xff]  ;;  %vm48_vm0 = vcmask 130048  }
   0x3   :  { %11 = vsyncpa [#allocation7], 0  ;;  %v239_v1 = vmov 1   ;;  %v240_v2 = vmov 0.0   ;;  %s34_s19 = sld [smem:[#allocation4]]  ;;  %v50_v3 = vlaneseq  ;;  %p190_p1 = scmp.le.s32.totalorder %s300_s1, 0 }
   0x4   :  { %213 = vset.pattern.permute.xlu0 %v239_v1  ;;  %49 = vst.msk [vmem:[#allocation6] sm:$0xff] %vm48_vm0, %v240_v2  ;;  %v241_v11 = vmov (!%p190_p1), 0   ;;  %v242_v15 = vmov (!%p190_p1), 0.0|0.0   ;;  %vm243_vm1 = vmmov (!%p190_p1), 0   ;;  %v244_v16 = vmov (!%p190_p1), 0.0  }
   0x5   :  { %55 = vperm.xlu0 %213, %v43_v0   ;;  %v51_v4 = vand.u32 127, %v50_v3  ;;  %203 = vmatprep.subr.bf16.mxu0 (!%p190_p1), %v242_v15 }
   0x6   :  { %200 = vmatprep.mubr.msk.f32.mxu0 (!%p190_p1), %vm243_vm1, %v244_v16 }
   0x7   :  { %v52_v5 = vcvt.s32.f32 %v51_v4 }
   0x9   :  { %s187_s20 = sshll.u32 %s34_s19, 1  ;;  %214 = vset.pattern.permute.xlu0 (!%p190_p1), %v241_v11 }
   0xa   :  { %p36_p0 = scmp.lt.s32.totalorder %s187_s20, 1  ;;  %79 = vperm.xlu0 (!%p190_p1), %214, %v43_v0  }
   0xb   :  { %v164_v26 = vld [vmem:[#allocation6] sm:$0xff] (!%p190_p1) }
   0xc   :  { %s305_s20 = smov (!%p36_p0, %s187_s20), 1 }
   0xd   :  { %s188_s21 = sshll.u32 %s305_s20, 3 }
   0xe   :  { %s39_s0 = scalar_lea.vmem %s302_s3, %s188_s21  ;;  %s69_s3 = sld [smem:[#allocation4]] (!%p190_p1) }
   0xf   :  { %v86_v12 = vld [vmem:[%s39_s0] sm:$0xff] (!%p190_p1)  ;;  %v87_v13 = vld [vmem:[%s39_s0 + $0x8] sm:$0xff] (!%p190_p1) }
  0x10   :  { %v204_v14 = vpack.c.bf16 (!%p190_p1), %v87_v13, %v86_v12 }
  0x12   :  { %205 = vmatpush3.bf16.msra.mxu0 (!%p190_p1), %v204_v14 }
  0x14   :  { %s191_s25 = sshll.u32 (!%p190_p1), %s69_s3, 4 }
  0x15   :  { %s71_s26 = scvt.s32.f32 (!%p190_p1), %s191_s25 }
  0x17   :  { %v75_v17 = vstv (!%p190_p1), %s71_s26 }
  0x18   :  { %v76_v18 = vadd.f32 (!%p190_p1), %v75_v17, %v52_v5 }
  0x84   :  { %v56_v6 = vpop.permute.xlu0 %55 }
  0x85   :  { %v58_v7 = vsub.f32 %v52_v5, %v56_v6 }
  0x87   :  { %v59_v8 = vand.u32 2147483647, %v58_v7  ;;  %68 = sbr.rel (%p190_p1) target bundleno = 363 (0x16b), region = 17 }
  0x89   :  { %v60_v9 = vsub.f32 1.0, %v59_v8  ;;  %v80_v19 = vpop.permute.xlu0 (!%p190_p1), %79 }
  0x8a   :  { %v82_v20 = vsub.f32 (!%p190_p1), %v76_v18, %v80_v19 }
  0x8b   :  { %v61_v10 = vmax.f32 %v60_v9, 0.0 }
  0x8c   :  { %v83_v21 = vand.u32 (!%p190_p1), 2147483647, %v82_v20 }
  0x8d   :  { %62 = vst.msk [vmem:[#allocation2] sm:$0xff] %vm48_vm0, %v61_v10 }
  0x8e   :  { %v84_v22 = vsub.f32 1.0, %v83_v21 }
  0x90   :  { %v85_v23 = vmax.f32 %v84_v22, 0.0 }
  0x92   :  { %201 = vmatmul.mubr.msk.f32.vlgmr.msra.gmra.mrb[0].mxu0 %vm48_vm0, %v85_v23 }
  0x94   :  { %v162_v24 = vld [vmem:[#allocation2] sm:$0xff] }
 0x165   :  { %v158_v25 = vpop.f32.mrb[0].mxu0 }
 0x166   :  { %v163_v27 = vmul.f32 %v162_v24, %v158_v25  ;;  %v202_v28 = vpop.f32.mrb[1].mxu0 }
 0x168   :  { %v165_v29 = vadd.f32 %v164_v26, %v163_v27 }
 0x16a   :  { %166 = vst.msk [vmem:[#allocation6] sm:$0xff] %vm48_vm0, %v165_v29 }
 0x16b PF:  { %s245_s1 = smov [#allocation6]  }
 0x16c   :  { %s173_s27 = sshll.u32 %s245_s1, 4  ;;  %s174_s27 = int_to_ptr.vmem [resolvable:$true] %s173_s27 }
 0x16d   :  { %s215_s28 = scalar_lea.vmem %s174_s27, 128  ;;  %p220_p3 = scmp.lt.s32.totalorder %s174_s27, %s174_s27 }
 0x16e   :  { %p216_p2 = scmp.ne.s32.totalorder %s174_s27, %s215_s28  ;;  %p221_p4 = scmp.lt.s32.totalorder %s215_s28, %s215_s28 }
 0x170   :  { %p222_p5 = por %p221_p4, %p220_p3 }
 0x172   :  { %p223_p6 = pnand %p222_p5, %p216_p2 }
 0x174   :  { %226 = shalt.err (!%p223_p6)
}
 0x175   :  { %s227_s5 = scalar_lea.hbm %s303_s4, 128 }
 0x176   :  { %p228_p7 = scmp.ne.s32.totalorder %s303_s4, %s227_s5  ;;  %p231_p8 = scmp.lt.u32.totalorder %s227_s5, %s303_s4 }
 0x178   :  { %p233_p9 = pnand %p231_p8, %p228_p7 }
 0x17a   :  { %236 = shalt.err (!%p233_p9)
}
 0x17b   :  { %176 = dma.vmem_to_hbm [thread:$0]  %s174_s27, 128, %s303_s4, [#allocation7]  }
 0x17c   :  { %237 = dma.done.wait [#allocation7], 128  }
 0x17d   :  { %238 = vsyncadd [#allocation7], 4294967168 }
 0x17e   :  { %180 = vsyncpa [#allocation7], 1 }

</bundles_post_ra>
